<compile_context>
chip_gen: v7x
topology: tpu7x:2x2x1
jax: 0.10.0
libtpu: 0.0.40
codegen_flags: <defaults>
</compile_context>

<pallas_src>
import functools

import jax
import jax.numpy as jnp
import numpy as np
from jax.experimental import pallas as pl
from jax.experimental.pallas import tpu as pltpu


def _mha_kernel(x_ref, wqkv_ref, bqkv_ref, wo_ref, bo_ref, o_ref,
                *, num_heads, head_dim, embed_dim):
    """One grid step == one batch element.

    x_ref:    (1, S, 3E) VMEM tile: [query | key | value] along features.
    wqkv_ref: (3E, 3E) block-diagonal fused projection weight (in x out),
              with 1/sqrt(head_dim) already folded into the Q block.
    bqkv_ref: (1, 3E) fused bias (Q part already scaled).
    wo_ref:   (E, E) output projection weight (in x out).
    bo_ref:   (1, E) output bias.
    o_ref:    (1, S, E) output tile.
    """
    E = embed_dim
    x = x_ref[0]                                    # (S, 3E), native dtype

    # Single fused MXU matmul for all three projections (f32 accumulate).
    qkv = jnp.dot(x, wqkv_ref[...],
                  preferred_element_type=jnp.float32) + bqkv_ref[0]   # (S, 3E)
    Q = qkv[:, 0 * E:1 * E]                         # (S, E), pre-scaled
    K = qkv[:, 1 * E:2 * E]
    V = qkv[:, 2 * E:3 * E]

    acc = None
    for h in range(num_heads):                      # static unroll (small H)
        lo = h * head_dim
        hi = lo + head_dim
        Qh = Q[:, lo:hi]                            # (S, D)
        Kh = K[:, lo:hi]                            # (S, D)
        Vh = V[:, lo:hi]                            # (S, D)

        # Q @ K^T without materializing a transpose: contract the last dims.
        energy = jax.lax.dot_general(
            Qh, Kh,
            dimension_numbers=(((1,), (1,)), ((), ())),
            preferred_element_type=jnp.float32)     # (S, S)

        # Numerically stable softmax; reciprocal goes to the EUP slot.
        energy = energy - jnp.max(energy, axis=-1, keepdims=True)
        p = jnp.exp(energy)
        p = p * pl.reciprocal(jnp.sum(p, axis=-1, keepdims=True), approx=True)

        head_out = jnp.dot(p, Vh, preferred_element_type=jnp.float32)  # (S, D)

        # Fold this head directly into the output projection (no concat):
        # rows [lo:hi) of wo correspond to this head's context columns.
        part = jnp.dot(head_out, wo_ref[lo:hi, :],
                       preferred_element_type=jnp.float32)             # (S, E)
        acc = part if acc is None else acc + part

    o_ref[0] = (acc + bo_ref[0]).astype(o_ref.dtype)


def multi_head_attention(query, key, value, params, *, num_heads):
    """query/key/value: (B, S, E).  params: PyTorch-style (out,in) weights + biases."""
    B, S, E = query.shape
    head_dim = E // num_heads
    assert num_heads * head_dim == E
    dtype = query.dtype
    inv_scale = 1.0 / float(np.sqrt(head_dim))

    # PyTorch Linear stores (out, in); the kernel wants (in, out).
    # Fold the attention scale into the Q projection (weight AND bias).
    wq_t = params["wq"].T * inv_scale
    wk_t = params["wk"].T
    wv_t = params["wv"].T
    bq = params["bq"] * inv_scale
    bk = params["bk"]
    bv = params["bv"]

    # Block-diagonal fused QKV weight: valid for cross-attention (q/k/v may
    # be different tensors), and for small E it packs all three projections
    # into a single wide MXU push.
    w_qkv = jnp.zeros((3 * E, 3 * E), dtype)
    w_qkv = w_qkv.at[0:E, 0:E].set(wq_t.astype(dtype))
    w_qkv = w_qkv.at[E:2 * E, E:2 * E].set(wk_t.astype(dtype))
    w_qkv = w_qkv.at[2 * E:, 2 * E:].set(wv_t.astype(dtype))
    b_qkv = jnp.concatenate([bq, bk, bv]).reshape(1, 3 * E).astype(jnp.float32)

    wo = params["wo"].T.astype(dtype)                    # (E, E)
    bo = params["bo"].reshape(1, E).astype(jnp.float32)  # (1, E)

    x_cat = jnp.concatenate([query, key, value], axis=-1)   # (B, S, 3E)

    kernel = functools.partial(_mha_kernel, num_heads=num_heads,
                               head_dim=head_dim, embed_dim=E)

    return pl.pallas_call(
        kernel,
        out_shape=jax.ShapeDtypeStruct((B, S, E), dtype),
        grid_spec=pltpu.PrefetchScalarGridSpec(
            num_scalar_prefetch=0,
            grid=(B,),
            in_specs=[
                pl.BlockSpec((1, S, 3 * E), lambda b: (b, 0, 0)),   # fused q|k|v
                pl.BlockSpec((3 * E, 3 * E), lambda b: (0, 0)),     # fused W_qkv
                pl.BlockSpec((1, 3 * E), lambda b: (0, 0)),         # fused bias
                pl.BlockSpec((E, E), lambda b: (0, 0)),             # W_o
                pl.BlockSpec((1, E), lambda b: (0, 0)),             # b_o
            ],
            out_specs=pl.BlockSpec((1, S, E), lambda b: (b, 0, 0)),
        ),
        compiler_params=pltpu.CompilerParams(
            dimension_semantics=("parallel",)),
    )(x_cat, w_qkv, b_qkv, wo, bo)


def _reference_mha(query, key, value, params, *, num_heads):
    """Pure-JAX reference matching the PyTorch forward (eval mode, mask=None)."""
    B, S, E = query.shape
    D = E // num_heads
    scale = jnp.sqrt(jnp.float32(D))

    def lin(x, w, b):
        return x @ w.T + b

    Q = lin(query, params["wq"], params["bq"])
    K = lin(key, params["wk"], params["bk"])
    V = lin(value, params["wv"], params["bv"])

    Q = Q.reshape(B, S, num_heads, D).transpose(0, 2, 1, 3)
    K = K.reshape(B, S, num_heads, D).transpose(0, 2, 1, 3)
    V = V.reshape(B, S, num_heads, D).transpose(0, 2, 1, 3)

    energy = jnp.einsum("bhqd,bhkd->bhqk", Q, K) / scale
    attn = jax.nn.softmax(energy, axis=-1)
    x = jnp.einsum("bhqk,bhkd->bhqd", attn, V)
    x = x.transpose(0, 2, 1, 3).reshape(B, S, E)
    return lin(x, params["wo"], params["bo"])


if __name__ == "__main__":
    # Small shapes consistent with the module: embedding_dim=32, num_heads=4.
    B, S, E, H = 2, 8, 32, 4

    root = jax.random.PRNGKey(0)
    keys = jax.random.split(root, 12)

    # Deterministic "nn.Linear"-like init (uniform ~ U(-1/sqrt(E), 1/sqrt(E))).
    bound = 1.0 / np.sqrt(E)

    def u(k, shape):
        return jax.random.uniform(k, shape, jnp.float32, -bound, bound)

    params = {
        "wq": u(keys[0], (E, E)), "bq": u(keys[1], (E,)),
        "wk": u(keys[2], (E, E)), "bk": u(keys[3], (E,)),
        "wv": u(keys[4], (E, E)), "bv": u(keys[5], (E,)),
        "wo": u(keys[6], (E, E)), "bo": u(keys[7], (E,)),
    }

    query = jax.random.normal(keys[8], (B, S, E), jnp.float32)
    key_in = jax.random.normal(keys[9], (B, S, E), jnp.float32)
    value = jax.random.normal(keys[10], (B, S, E), jnp.float32)

    out = multi_head_attention(query, key_in, value, params, num_heads=H)
    out = jax.block_until_ready(out)

    ref = _reference_mha(query, key_in, value, params, num_heads=H)
    # Tolerance widened slightly vs. pure-f32: approx (EUP) reciprocal in the
    # softmax denominator and the folded scale reorder floating-point ops.
    np.testing.assert_allclose(np.asarray(out), np.asarray(ref),
                               atol=2e-3, rtol=2e-3)

    print("KERNEL_OK")
</pallas_src>

<mosaic_0001>
module attributes {stable_mosaic.version = 11 : i64} {
  func.func @_mha_kernel(%arg0: i32, %arg1: memref<1x8x96xf32, #tpu.memory_space<vmem>>, %arg2: memref<96x96xf32, #tpu.memory_space<vmem>>, %arg3: memref<1x96xf32, #tpu.memory_space<vmem>>, %arg4: memref<32x32xf32, #tpu.memory_space<vmem>>, %arg5: memref<1x32xf32, #tpu.memory_space<vmem>>, %arg6: memref<1x8x32xf32, #tpu.memory_space<vmem>>) attributes {dimension_semantics = [#tpu.dimension_semantics<parallel>], iteration_bounds = array<i64: 2>, scalar_prefetch = 0 : i64, scratch_operands = 0 : i64, tpu.core_type = #tpu.core_type<tc>, window_params = [{transform_indices = @transform_0, window_bounds = array<i64: 1, 8, 96>}, {pipeline_mode = #tpu.pipeline_mode<synchronous>, transform_indices = @transform_1, window_bounds = array<i64: 96, 96>}, {pipeline_mode = #tpu.pipeline_mode<synchronous>, transform_indices = @transform_2, window_bounds = array<i64: 1, 96>}, {pipeline_mode = #tpu.pipeline_mode<synchronous>, transform_indices = @transform_3, window_bounds = array<i64: 32, 32>}, {pipeline_mode = #tpu.pipeline_mode<synchronous>, transform_indices = @transform_4, window_bounds = array<i64: 1, 32>}, {transform_indices = @transform_5, window_bounds = array<i64: 1, 8, 32>}]} {
    %c0 = arith.constant 0 : index
    %c0_0 = arith.constant 0 : index
    %c0_1 = arith.constant 0 : index
    %0 = vector.load %arg1[%c0, %c0_0, %c0_1] : memref<1x8x96xf32, #tpu.memory_space<vmem>>, vector<1x8x96xf32>
    %1 = vector.shape_cast %0 : vector<1x8x96xf32> to vector<8x96xf32>
    %c0_2 = arith.constant 0 : index
    %c0_3 = arith.constant 0 : index
    %2 = vector.load %arg2[%c0_2, %c0_3] : memref<96x96xf32, #tpu.memory_space<vmem>>, vector<96x96xf32>
    %cst = arith.constant dense<0.000000e+00> : vector<8x96xf32>
    %3 = tpu.matmul %1, %2, %cst {dimension_numbers = #tpu.dot_dimension_numbers<[1], [0], [0], [1], [0, 0, 1, 1], [], []>} : vector<8x96xf32>, vector<96x96xf32>, vector<8x96xf32> -> vector<8x96xf32>
    %c0_4 = arith.constant 0 : index
    %c0_5 = arith.constant 0 : index
    %4 = vector.load %arg3[%c0_4, %c0_5] : memref<1x96xf32, #tpu.memory_space<vmem>>, vector<1x96xf32>
    %5 = vector.shape_cast %4 : vector<1x96xf32> to vector<96xf32>
    %6 = vector.shape_cast %5 : vector<96xf32> to vector<1x96xf32>
    %7 = vector.broadcast %6 : vector<1x96xf32> to vector<8x96xf32>
    %8 = arith.addf %3, %7 : vector<8x96xf32>
    %9 = vector.extract_strided_slice %8 {offsets = [0, 0], sizes = [8, 32], strides = [1, 1]} : vector<8x96xf32> to vector<8x32xf32>
    %10 = vector.extract_strided_slice %8 {offsets = [0, 32], sizes = [8, 32], strides = [1, 1]} : vector<8x96xf32> to vector<8x32xf32>
    %11 = vector.extract_strided_slice %8 {offsets = [0, 64], sizes = [8, 32], strides = [1, 1]} : vector<8x96xf32> to vector<8x32xf32>
    %12 = vector.extract_strided_slice %9 {offsets = [0, 0], sizes = [8, 8], strides = [1, 1]} : vector<8x32xf32> to vector<8x8xf32>
    %13 = vector.extract_strided_slice %10 {offsets = [0, 0], sizes = [8, 8], strides = [1, 1]} : vector<8x32xf32> to vector<8x8xf32>
    %14 = vector.extract_strided_slice %11 {offsets = [0, 0], sizes = [8, 8], strides = [1, 1]} : vector<8x32xf32> to vector<8x8xf32>
    %cst_6 = arith.constant dense<0.000000e+00> : vector<8x8xf32>
    %15 = tpu.matmul %12, %13, %cst_6 {dimension_numbers = #tpu.dot_dimension_numbers<[1], [1], [0], [0], [0, 0, 1, 0], [], []>} : vector<8x8xf32>, vector<8x8xf32>, vector<8x8xf32> -> vector<8x8xf32>
    %cst_7 = arith.constant dense<0xFF800000> : vector<8xf32>
    %16 = vector.multi_reduction <maximumf>, %15, %cst_7 [1] : vector<8x8xf32> to vector<8xf32>
    %17 = vector.shape_cast %16 : vector<8xf32> to vector<8x1xf32>
    %18 = vector.broadcast %17 : vector<8x1xf32> to vector<8x8xf32>
    %19 = arith.subf %15, %18 : vector<8x8xf32>
    %20 = math.exp %19 : vector<8x8xf32>
    %cst_8 = arith.constant dense<0.000000e+00> : vector<8xf32>
    %21 = vector.multi_reduction <add>, %20, %cst_8 [1] : vector<8x8xf32> to vector<8xf32>
    %22 = vector.shape_cast %21 : vector<8xf32> to vector<8x1xf32>
    %23 = tpu.reciprocal %22 {approx = true} : vector<8x1xf32> -> vector<8x1xf32>
    %24 = vector.broadcast %23 : vector<8x1xf32> to vector<8x8xf32>
    %25 = arith.mulf %20, %24 : vector<8x8xf32>
    %cst_9 = arith.constant dense<0.000000e+00> : vector<8x8xf32>
    %26 = tpu.matmul %25, %14, %cst_9 {dimension_numbers = #tpu.dot_dimension_numbers<[1], [0], [0], [1], [0, 0, 1, 1], [], []>} : vector<8x8xf32>, vector<8x8xf32>, vector<8x8xf32> -> vector<8x8xf32>
    %c0_10 = arith.constant 0 : index
    %c0_11 = arith.constant 0 : index
    %27 = vector.load %arg4[%c0_10, %c0_11] : memref<32x32xf32, #tpu.memory_space<vmem>>, vector<8x32xf32>
    %cst_12 = arith.constant dense<0.000000e+00> : vector<8x32xf32>
    %28 = tpu.matmul %26, %27, %cst_12 {dimension_numbers = #tpu.dot_dimension_numbers<[1], [0], [0], [1], [0, 0, 1, 1], [], []>} : vector<8x8xf32>, vector<8x32xf32>, vector<8x32xf32> -> vector<8x32xf32>
    %29 = vector.extract_strided_slice %9 {offsets = [0, 8], sizes = [8, 8], strides = [1, 1]} : vector<8x32xf32> to vector<8x8xf32>
    %30 = vector.extract_strided_slice %10 {offsets = [0, 8], sizes = [8, 8], strides = [1, 1]} : vector<8x32xf32> to vector<8x8xf32>
    %31 = vector.extract_strided_slice %11 {offsets = [0, 8], sizes = [8, 8], strides = [1, 1]} : vector<8x32xf32> to vector<8x8xf32>
    %cst_13 = arith.constant dense<0.000000e+00> : vector<8x8xf32>
    %32 = tpu.matmul %29, %30, %cst_13 {dimension_numbers = #tpu.dot_dimension_numbers<[1], [1], [0], [0], [0, 0, 1, 0], [], []>} : vector<8x8xf32>, vector<8x8xf32>, vector<8x8xf32> -> vector<8x8xf32>
    %cst_14 = arith.constant dense<0xFF800000> : vector<8xf32>
    %33 = vector.multi_reduction <maximumf>, %32, %cst_14 [1] : vector<8x8xf32> to vector<8xf32>
    %34 = vector.shape_cast %33 : vector<8xf32> to vector<8x1xf32>
    %35 = vector.broadcast %34 : vector<8x1xf32> to vector<8x8xf32>
    %36 = arith.subf %32, %35 : vector<8x8xf32>
    %37 = math.exp %36 : vector<8x8xf32>
    %cst_15 = arith.constant dense<0.000000e+00> : vector<8xf32>
    %38 = vector.multi_reduction <add>, %37, %cst_15 [1] : vector<8x8xf32> to vector<8xf32>
    %39 = vector.shape_cast %38 : vector<8xf32> to vector<8x1xf32>
    %40 = tpu.reciprocal %39 {approx = true} : vector<8x1xf32> -> vector<8x1xf32>
    %41 = vector.broadcast %40 : vector<8x1xf32> to vector<8x8xf32>
    %42 = arith.mulf %37, %41 : vector<8x8xf32>
    %cst_16 = arith.constant dense<0.000000e+00> : vector<8x8xf32>
    %43 = tpu.matmul %42, %31, %cst_16 {dimension_numbers = #tpu.dot_dimension_numbers<[1], [0], [0], [1], [0, 0, 1, 1], [], []>} : vector<8x8xf32>, vector<8x8xf32>, vector<8x8xf32> -> vector<8x8xf32>
    %c8 = arith.constant 8 : index
    %c0_17 = arith.constant 0 : index
    %44 = vector.load %arg4[%c8, %c0_17] : memref<32x32xf32, #tpu.memory_space<vmem>>, vector<8x32xf32>
    %cst_18 = arith.constant dense<0.000000e+00> : vector<8x32xf32>
    %45 = tpu.matmul %43, %44, %cst_18 {dimension_numbers = #tpu.dot_dimension_numbers<[1], [0], [0], [1], [0, 0, 1, 1], [], []>} : vector<8x8xf32>, vector<8x32xf32>, vector<8x32xf32> -> vector<8x32xf32>
    %46 = arith.addf %28, %45 : vector<8x32xf32>
    %47 = vector.extract_strided_slice %9 {offsets = [0, 16], sizes = [8, 8], strides = [1, 1]} : vector<8x32xf32> to vector<8x8xf32>
    %48 = vector.extract_strided_slice %10 {offsets = [0, 16], sizes = [8, 8], strides = [1, 1]} : vector<8x32xf32> to vector<8x8xf32>
    %49 = vector.extract_strided_slice %11 {offsets = [0, 16], sizes = [8, 8], strides = [1, 1]} : vector<8x32xf32> to vector<8x8xf32>
    %cst_19 = arith.constant dense<0.000000e+00> : vector<8x8xf32>
    %50 = tpu.matmul %47, %48, %cst_19 {dimension_numbers = #tpu.dot_dimension_numbers<[1], [1], [0], [0], [0, 0, 1, 0], [], []>} : vector<8x8xf32>, vector<8x8xf32>, vector<8x8xf32> -> vector<8x8xf32>
    %cst_20 = arith.constant dense<0xFF800000> : vector<8xf32>
    %51 = vector.multi_reduction <maximumf>, %50, %cst_20 [1] : vector<8x8xf32> to vector<8xf32>
    %52 = vector.shape_cast %51 : vector<8xf32> to vector<8x1xf32>
    %53 = vector.broadcast %52 : vector<8x1xf32> to vector<8x8xf32>
    %54 = arith.subf %50, %53 : vector<8x8xf32>
    %55 = math.exp %54 : vector<8x8xf32>
    %cst_21 = arith.constant dense<0.000000e+00> : vector<8xf32>
    %56 = vector.multi_reduction <add>, %55, %cst_21 [1] : vector<8x8xf32> to vector<8xf32>
    %57 = vector.shape_cast %56 : vector<8xf32> to vector<8x1xf32>
    %58 = tpu.reciprocal %57 {approx = true} : vector<8x1xf32> -> vector<8x1xf32>
    %59 = vector.broadcast %58 : vector<8x1xf32> to vector<8x8xf32>
    %60 = arith.mulf %55, %59 : vector<8x8xf32>
    %cst_22 = arith.constant dense<0.000000e+00> : vector<8x8xf32>
    %61 = tpu.matmul %60, %49, %cst_22 {dimension_numbers = #tpu.dot_dimension_numbers<[1], [0], [0], [1], [0, 0, 1, 1], [], []>} : vector<8x8xf32>, vector<8x8xf32>, vector<8x8xf32> -> vector<8x8xf32>
    %c16 = arith.constant 16 : index
    %c0_23 = arith.constant 0 : index
    %62 = vector.load %arg4[%c16, %c0_23] : memref<32x32xf32, #tpu.memory_space<vmem>>, vector<8x32xf32>
    %cst_24 = arith.constant dense<0.000000e+00> : vector<8x32xf32>
    %63 = tpu.matmul %61, %62, %cst_24 {dimension_numbers = #tpu.dot_dimension_numbers<[1], [0], [0], [1], [0, 0, 1, 1], [], []>} : vector<8x8xf32>, vector<8x32xf32>, vector<8x32xf32> -> vector<8x32xf32>
    %64 = arith.addf %46, %63 : vector<8x32xf32>
    %65 = vector.extract_strided_slice %9 {offsets = [0, 24], sizes = [8, 8], strides = [1, 1]} : vector<8x32xf32> to vector<8x8xf32>
    %66 = vector.extract_strided_slice %10 {offsets = [0, 24], sizes = [8, 8], strides = [1, 1]} : vector<8x32xf32> to vector<8x8xf32>
    %67 = vector.extract_strided_slice %11 {offsets = [0, 24], sizes = [8, 8], strides = [1, 1]} : vector<8x32xf32> to vector<8x8xf32>
    %cst_25 = arith.constant dense<0.000000e+00> : vector<8x8xf32>
    %68 = tpu.matmul %65, %66, %cst_25 {dimension_numbers = #tpu.dot_dimension_numbers<[1], [1], [0], [0], [0, 0, 1, 0], [], []>} : vector<8x8xf32>, vector<8x8xf32>, vector<8x8xf32> -> vector<8x8xf32>
    %cst_26 = arith.constant dense<0xFF800000> : vector<8xf32>
    %69 = vector.multi_reduction <maximumf>, %68, %cst_26 [1] : vector<8x8xf32> to vector<8xf32>
    %70 = vector.shape_cast %69 : vector<8xf32> to vector<8x1xf32>
    %71 = vector.broadcast %70 : vector<8x1xf32> to vector<8x8xf32>
    %72 = arith.subf %68, %71 : vector<8x8xf32>
    %73 = math.exp %72 : vector<8x8xf32>
    %cst_27 = arith.constant dense<0.000000e+00> : vector<8xf32>
    %74 = vector.multi_reduction <add>, %73, %cst_27 [1] : vector<8x8xf32> to vector<8xf32>
    %75 = vector.shape_cast %74 : vector<8xf32> to vector<8x1xf32>
    %76 = tpu.reciprocal %75 {approx = true} : vector<8x1xf32> -> vector<8x1xf32>
    %77 = vector.broadcast %76 : vector<8x1xf32> to vector<8x8xf32>
    %78 = arith.mulf %73, %77 : vector<8x8xf32>
    %cst_28 = arith.constant dense<0.000000e+00> : vector<8x8xf32>
    %79 = tpu.matmul %78, %67, %cst_28 {dimension_numbers = #tpu.dot_dimension_numbers<[1], [0], [0], [1], [0, 0, 1, 1], [], []>} : vector<8x8xf32>, vector<8x8xf32>, vector<8x8xf32> -> vector<8x8xf32>
    %c24 = arith.constant 24 : index
    %c0_29 = arith.constant 0 : index
    %80 = vector.load %arg4[%c24, %c0_29] : memref<32x32xf32, #tpu.memory_space<vmem>>, vector<8x32xf32>
    %cst_30 = arith.constant dense<0.000000e+00> : vector<8x32xf32>
    %81 = tpu.matmul %79, %80, %cst_30 {dimension_numbers = #tpu.dot_dimension_numbers<[1], [0], [0], [1], [0, 0, 1, 1], [], []>} : vector<8x8xf32>, vector<8x32xf32>, vector<8x32xf32> -> vector<8x32xf32>
    %82 = arith.addf %64, %81 : vector<8x32xf32>
    %c0_31 = arith.constant 0 : index
    %c0_32 = arith.constant 0 : index
    %83 = vector.load %arg5[%c0_31, %c0_32] : memref<1x32xf32, #tpu.memory_space<vmem>>, vector<1x32xf32>
    %84 = vector.shape_cast %83 : vector<1x32xf32> to vector<32xf32>
    %85 = vector.shape_cast %84 : vector<32xf32> to vector<1x32xf32>
    %86 = vector.broadcast %85 : vector<1x32xf32> to vector<8x32xf32>
    %87 = arith.addf %82, %86 : vector<8x32xf32>
    %c0_33 = arith.constant 0 : index
    %c0_34 = arith.constant 0 : index
    %c0_35 = arith.constant 0 : index
    %88 = vector.load %arg6[%c0_33, %c0_34, %c0_35] : memref<1x8x32xf32, #tpu.memory_space<vmem>>, vector<1x8x32xf32>
    %89 = vector.shape_cast %88 : vector<1x8x32xf32> to vector<8x32xf32>
    %90 = vector.shape_cast %87 : vector<8x32xf32> to vector<1x8x32xf32>
    tpu.vector_store %arg6[%c0_33, %c0_34, %c0_35], %90 {strides = array<i32>} : memref<1x8x32xf32, #tpu.memory_space<vmem>>, vector<1x8x32xf32>,
    return
  }
  func.func @transform_0(%arg0: i32) -> (i32, i32, i32) {
    %c0_i32 = arith.constant 0 : i32
    %c0_i32_0 = arith.constant 0 : i32
    %c0_i32_1 = arith.constant 0 : i32
    return %arg0, %c0_i32, %c0_i32_0 : i32, i32, i32
  }
  func.func @transform_1(%arg0: i32) -> (i32, i32) {
    %c0_i32 = arith.constant 0 : i32
    %c0_i32_0 = arith.constant 0 : i32
    %c0_i32_1 = arith.constant 0 : i32
    return %c0_i32, %c0_i32_0 : i32, i32
  }
  func.func @transform_2(%arg0: i32) -> (i32, i32) {
    %c0_i32 = arith.constant 0 : i32
    %c0_i32_0 = arith.constant 0 : i32
    %c0_i32_1 = arith.constant 0 : i32
    return %c0_i32, %c0_i32_0 : i32, i32
  }
  func.func @transform_3(%arg0: i32) -> (i32, i32) {
    %c0_i32 = arith.constant 0 : i32
    %c0_i32_0 = arith.constant 0 : i32
    %c0_i32_1 = arith.constant 0 : i32
    return %c0_i32, %c0_i32_0 : i32, i32
  }
  func.func @transform_4(%arg0: i32) -> (i32, i32) {
    %c0_i32 = arith.constant 0 : i32
    %c0_i32_0 = arith.constant 0 : i32
    %c0_i32_1 = arith.constant 0 : i32
    return %c0_i32, %c0_i32_0 : i32, i32
  }
  func.func @transform_5(%arg0: i32) -> (i32, i32, i32) {
    %c0_i32 = arith.constant 0 : i32
    %c0_i32_0 = arith.constant 0 : i32
    %c0_i32_1 = arith.constant 0 : i32
    return %arg0, %c0_i32, %c0_i32_0 : i32, i32, i32
  }
}

</mosaic_0001>

<bundles_post_ra>
// kernel: tpu_custom_call.1
= control target key start
LH: loop header
LB: loop body
LE: loop exit
PB: predicated region body
PF: predicated region fallthrough
CT: control target
= control target key end

     0   :  { %10 = vsyncpa [#allocation3], 0  ;;  %s2236_s0 = inlined_call_operand.hbm [shape: f32[2,8,96], index: 0, kind: input, shape index: {}]   ;;  %s2237_s1 = inlined_call_operand.hbm [shape: f32[96,96], index: 1, kind: input, shape index: {}]   ;;  %s2238_s2 = inlined_call_operand.vmem [shape: f32[1,96], index: 2, kind: input, shape index: {}]   ;;  %s2239_s3 = inlined_call_operand.hbm [shape: f32[32,32], index: 3, kind: input, shape index: {}]   ;;  %s2240_s4 = inlined_call_operand.vmem [shape: f32[1,32], index: 4, kind: input, shape index: {}]   ;;  %s2241_s5 = inlined_call_operand.hbm [shape: f32[2,8,32], index: 5, kind: output, shape index: {}]  }
   0x1   :  { %12 = vsyncpa [#allocation3 + $0x1], 0 }
   0x2   :  { %13 = vsyncpa [#allocation6], 0 }
   0x3   :  { %14 = vsyncpa [#allocation4], 0 }
   0x4   :  { %16 = vsyncpa [#allocation4 + $0x1], 0  ;;  %s1918_s18 = smov 0   ;;  %s1920_s19 = smov 0  }
   0x5   :  { %s1922_s20 = smov 0   ;;  %s1924_s21 = smov 0  }
   0x6 LB: > { %s1939_s22 = sadd.s32 4294967295, %s1866_s21   ;;  %s1434_s23 = sadd.s32 4294967294, %s1866_s21   ;;  %s1866_s21 = sphi %s1924_s21, %s2261_s21   ;;  %s1862_s20 = sphi %s1922_s20, %s2260_s20   ;;  %s1858_s19 = sphi %s1920_s19, %s2259_s19   ;;  %s1854_s18 = sphi %s1918_s18, %s2258_s18  }
   0x7   : > { %p42_p0 = scmp.ne.s32.totalorder %s1858_s19, %s1854_s18  ;;  %p2242_p1 = scmp.eq.s32.totalorder %s1939_s22, 0 }
   0x8   : > { %p156_p3 = scmp.eq.s32.totalorder %s1434_s23, 1  ;;  %p1435_p5 = scmp.ge.s32.totalorder %s1866_s21, 1 }
   0x9   : > { %p1948_p4 = por %p2242_p1, %p42_p0  ;;  %p163_p7 = scmp.lt.s32.totalorder %s1866_s21, 3 }
   0xa   : > { %p1953_p6 = por %p156_p3, %p42_p0  ;;  %s1868_s27 = smov [#allocation5]  }
   0xb   : > { %s2245_s24 = scalar_select %p1948_p4, 1, 0 }
   0xc   : > { %s2246_s25 = scalar_select %p1953_p6, 1, 0 }
   0xd   : > { %p1958_p8 = pnand %p1435_p5, %p163_p7  ;;  %s175_s28 = sshll.u32 %s1868_s27, 4  ;;  %s1962_s28 = int_to_ptr.vmem [resolvable:$true] %s175_s28 }
   0xe   : > { %s1869_s30 = smov [#allocation7]   ;;  %s1710_s9 = scalar_lea.hbm %s2237_s1, 1536 }
   0xf   : > { %p1623_p9 = pneg %p1958_p8  ;;  %s191_s6 = sshll.u32 %s1869_s30, 4  ;;  %s1973_s6 = int_to_ptr.vmem [resolvable:$true] %s191_s6 }
  0x10   : > { %p1711_p12 = scmp.ne.s32.totalorder %s2237_s1, %s1710_s9  ;;  %p1717_p5 = scmp.lt.u32.totalorder %s1710_s9, %s2237_s1 }
  0x11   : > { %p1969_p11 = pnand %p1623_p9, %p2242_p1 }
  0x13   : > { %p1712_p13 = pneg %p1969_p11 }
  0x15   : > { %p1713_p0 = pnand %p1712_p13, %p1711_p12 }
  0x17   : > { %p1714_p3 = pneg %p1713_p0 }
  0x19   : > { %p1719_p7 = pnand %p1717_p5, %p1714_p3 }
  0x1b   : > { %1722 = shalt.err (!%p1719_p7)
}
  0x1c   : > { %s1723_s14 = scalar_lea.vmem %s1962_s28, 1536  ;;  %p1731_p2 = scmp.lt.s32.totalorder %s1962_s28, %s1962_s28 }
  0x1d   : > { %p1724_p9 = scmp.ne.s32.totalorder %s1962_s28, %s1723_s14  ;;  %p1732_p12 = scmp.lt.s32.totalorder %s1723_s14, %s1723_s14 }
  0x1f   : > { %p1726_p10 = pnand %p1724_p9, %p1712_p13  ;;  %p1733_p0 = por %p1732_p12, %p1731_p2 }
  0x21   : > { %p1727_p1 = pneg %p1726_p10 }
  0x23   : > { %p1734_p6 = pnand %p1733_p0, %p1727_p1 }
  0x25   : > { %1737 = shalt.err (!%p1734_p6)
}
  0x26   : > { %s1870_s15 = smov 128   ;;  %s1871_s16 = smov 8  }
  0x27   : > { %1626 = dma.hbm_to_vmem [thread:$0]  (!%p1969_p11), %s2237_s1, 1536, %s1962_s28, [#allocation6], %s1870_s15, %s1870_s15, %s1871_s16  }
  0x28   : > { %s1738_s7 = scalar_lea.hbm %s2239_s3, 512 }
  0x29   : > { %p1739_p2 = scmp.ne.s32.totalorder %s2239_s3, %s1738_s7  ;;  %p1745_p10 = scmp.lt.u32.totalorder %s1738_s7, %s2239_s3 }
  0x2b   : > { %p1741_p1 = pnand %p1739_p2, %p1712_p13 }
  0x2d   : > { %p1742_p6 = pneg %p1741_p1 }
  0x2f   : > { %p1747_p3 = pnand %p1745_p10, %p1742_p6 }
  0x31   : > { %1750 = shalt.err (!%p1747_p3)
}
  0x32   : > { %s1751_s28 = scalar_lea.vmem %s1973_s6, 512  ;;  %p1759_p12 = scmp.lt.s32.totalorder %s1973_s6, %s1973_s6 }
  0x33   : > { %p1752_p5 = scmp.ne.s32.totalorder %s1973_s6, %s1751_s28  ;;  %p1760_p0 = scmp.lt.s32.totalorder %s1751_s28, %s1751_s28 }
  0x35   : > { %p1754_p7 = pnand %p1752_p5, %p1712_p13  ;;  %p1761_p2 = por %p1760_p0, %p1759_p12 }
  0x37   : > { %p1755_p9 = pneg %p1754_p7 }
  0x39   : > { %p1762_p1 = pnand %p1761_p2, %p1755_p9 }
  0x3b   : > { %1765 = shalt.err (!%p1762_p1)
}
  0x3c   : > { %1629 = dma.hbm_to_vmem [thread:$0]  (!%p1969_p11), %s2239_s3, 512, %s1973_s6, [#allocation6], %s1870_s15, %s1870_s15, %s1871_s16  }
  0x3d   : > { %s2028_s14 = sadd.s32 1, %s1866_s21   ;;  %s29_s29 = sadd.s32 1, %s1862_s20 }
  0x3e   : > { %s26_s17 = ssub.s32 %s1866_s21, %s2028_s14  ;;  %p36_p13 = scmp.ne.s32.totalorder %s1862_s20, %s1858_s19 }
  0x3f   : > { %p27_p6 = scmp.eq.s32.totalorder %s26_s17, 0  ;;  %p37_p10 = scmp.eq.s32.totalorder %s1866_s21, 0 }
  0x40   : > { %p2249_p3 = scmp.eq.s32.totalorder %s1939_s22, 1  ;;  %p1640_p7 = scmp.lt.s32.totalorder %s1866_s21, 2 }
  0x41   : > { %s2044_s27 = scalar_select %p27_p6, %s1862_s20, %s29_s29  }
  0x42   : > { %p2038_p5 = por %p2249_p3, %p36_p13  ;;  %p38_p9 = por %p37_p10, %p36_p13 }
  0x43   : > { %s208_s30 = sand.u32 1, %s1862_s20   ;;  %s1440_s6 = sshll.u32 %s1866_s21, 7 }
  0x44   : > { %s2250_s23 = scalar_select %p2038_p5, 1, 0 }
  0x45   : > { %s1439_s7 = sshll.u32 %s208_s30, 3  ;;  %s2051_s8 = scalar_lea.hbm %s2236_s0, %s1440_s6 }
  0x46   : > { %s212_s9 = scalar_lea.vmem [#allocation2], %s1439_s7  ;;  %p2055_p11 = pnand %p1640_p7, %p38_p9 }
  0x47   : > { %s219_s10 = sshll.u32 %s212_s9, 4  ;;  %s209_s28 = scalar_lea.sflag [#allocation3], %s208_s30  ;;  %s2053_s10 = int_to_ptr.vmem [resolvable:$true] %s219_s10 }
  0x48   : > { %s1766_s12 = scalar_lea.hbm %s2051_s8, 128  ;;  %p1768_p0 = pneg %p2055_p11 }
  0x49   : > { %p1767_p12 = scmp.ne.s32.totalorder %s2051_s8, %s1766_s12  ;;  %s1771_s17 = scalar_lea.hbm %s2236_s0, 256 }
  0x4a   : > { %p1772_p13 = scmp.lt.u32.totalorder %s2051_s8, %s2236_s0  ;;  %p1773_p6 = scmp.lt.u32.totalorder %s1771_s17, %s1766_s12 }
  0x4b   : > { %p1769_p2 = pnand %p1768_p0, %p1767_p12  ;;  %p1775_p3 = scmp.lt.u32.totalorder %s1766_s12, %s2051_s8 }
  0x4c   : > { %p1774_p10 = por %p1773_p6, %p1772_p13 }
  0x4d   : > { %p1770_p1 = pneg %p1769_p2 }
  0x4e   : > { %p1776_p7 = por %p1775_p3, %p1774_p10 }
  0x50   : > { %p1777_p9 = pnand %p1776_p7, %p1770_p1 }
  0x52   : > { %1780 = shalt.err (!%p1777_p9)
}
  0x53   : > { %s1781_s30 = scalar_lea.vmem %s2053_s10, 128  ;;  %s1872_s15 = smov [#allocation2]  }
  0x54   : > { %p1782_p12 = scmp.ne.s32.totalorder %s2053_s10, %s1781_s30  ;;  %s1786_s16 = sshll.u32 %s1872_s15, 4  ;;  %s1787_s16 = int_to_ptr.vmem [resolvable:$false] %s1786_s16 }
  0x55   : > { %s1788_s9 = scalar_lea.vmem %s1787_s16, 256  ;;  %p1789_p4 = scmp.lt.s32.totalorder %s2053_s10, %s1787_s16 }
  0x56   : > { %p1784_p2 = pnand %p1782_p12, %p1768_p0  ;;  %p1790_p13 = scmp.lt.s32.totalorder %s1788_s9, %s1781_s30 }
  0x58   : > { %p1785_p5 = pneg %p1784_p2  ;;  %p1791_p6 = por %p1790_p13, %p1789_p4 }
  0x5a   : > { %p1792_p10 = pnand %p1791_p6, %p1785_p5 }
  0x5c   : > { %1795 = shalt.err (!%p1792_p10)
}
  0x5d   : > { %1633 = dma.hbm_to_vmem [thread:$0]  (!%p2055_p11), %s2051_s8, 128, %s2053_s10, %s209_s28  }
  0x5e   : > { %228 = sbr.rel (%p1958_p8) target bundleno = 2714 (0xa9a), region = 40  ;;  %s2087_s12 = sand.u32 (!%p1958_p8), 1, %s1858_s19  }
  0x5f   : > { %s1442_s13 = sshll.u32 (!%p1958_p8), %s2087_s12, 3  ;;  %s231_s29 = scalar_lea.sflag (!%p1958_p8), [#allocation3], %s2087_s12 }
  0x60   : > { %s2093_s17 = scalar_lea.vmem (!%p1958_p8), [#allocation2], %s1442_s13  ;;  %p2252_p4 = scmp.ne.s32.totalorder (!%p1958_p8), %s2245_s24, 0 }
  0x65   : > { %1841 = dma.done.wait (%p2252_p4), %s231_s29, 128  }
  0x66   : > { %1843 = vsyncadd (%p2252_p4), %s231_s29, 4294967168  ;;  %p2253_p5 = scmp.eq.s32.totalorder %s1939_s22, 0 }
  0x68   : > { %1845 = dma.done.wait (%p2253_p5), [#allocation6], 2048   ;;  %p2254_p8 = pmov %p2253_p5 }
  0x69   : > { %v1873_v0 = vmov 0.0|0.0   ;;  %vm1874_vm0 = vmmov 0   ;;  %v1875_v1 = vmov 0.0   ;;  %v270_v2 = vld [vmem:[#allocation5] sm:$0xff]  ;;  %v271_v3 = vld [vmem:[#allocation5 + $0x8] sm:$0xff]  ;;  %v272_v4 = vld [vmem:[#allocation5 + $0x10] sm:$0xff] }
  0x6a   : > { %1847 = vsyncadd (%p2254_p8), [#allocation6], 4294965248  ;;  %1593 = vmatprep.subr.bf16.mxu0 %v1873_v0  ;;  %1530 = vmatprep.mubr.msk.f32.mxu0 %vm1874_vm0, %v1875_v1  ;;  %v1594_v5 = vpack.c.bf16 %v271_v3, %v270_v2  ;;  %v273_v6 = vld [vmem:[#allocation5 + $0x18] sm:$0xff]  ;;  %v274_v8 = vld [vmem:[#allocation5 + $0x20] sm:$0xff]  ;;  %vm289_vm1 = vcmask 785408   ;;  %s1876_s8 = smov 64  }
  0x6b   : > { %1533 = vmatprep.subr.mxu1 %v1875_v1  ;;  %1535 = vmatprep.mubr.msk.f32.mxu1 %vm1874_vm0, %v1875_v1  ;;  %v1597_v7 = vpack.c.bf16 %v273_v6, %v272_v4  ;;  %v275_v9 = vld [vmem:[#allocation5 + $0x28] sm:$0xff]  ;;  %v276_v11 = vld [vmem:[#allocation5 + $0x30] sm:$0xff]  ;;  %v277_v12 = vld [vmem:[#allocation5 + $0x38] sm:$0xff]  ;;  %s1877_s10 = smov 96   ;;  %s1878_s11 = smov 88   ;;  %vm366_vm2 = vcmask 64512  }
  0x6c   : > { %1595 = vmatpush3.bf16.msra.mxu0 %v1594_v5  ;;  %v1600_v10 = vpack.c.bf16 %v275_v9, %v274_v8  ;;  %v1603_v13 = vpack.c.bf16 %v277_v12, %v276_v11  ;;  %v278_v14 = vld [vmem:[#allocation5 + $0x40] sm:$0xff]  ;;  %v279_v15 = vld [vmem:[#allocation5 + $0x48] sm:$0xff]  ;;  %v280_v17 = vld [vmem:[#allocation5 + $0x50] sm:$0xff]  ;;  %s1879_s28 = smov 120   ;;  %s1880_s7 = smov 80   ;;  %vm1329_vm3 = vcmask 261120  }
  0x6d   : > { %1596 = vmatprep.subr.bf16.mxu0 %v1873_v0  ;;  %v1606_v16 = vpack.c.bf16 %v279_v15, %v278_v14  ;;  %v281_v18 = vld [vmem:[#allocation5 + $0x58] sm:$0xff]  ;;  %v1446_v21 = vld [vmem:[%s2238_s2] ss:$0 sm:$0xff]  ;;  %s1881_s6 = smov 112   ;;  %s1882_s30 = smov 56   ;;  %v528_v3 = vld [vmem:[#allocation7] sm:$0xff] }
  0x6e   : > { %v1609_v19 = vpack.c.bf16 %v281_v18, %v280_v17  ;;  %v269_v20 = vld [vmem:[%s2093_s17] sm:$0xff]  ;;  %s1883_s15 = smov 72   ;;  %s1884_s16 = smov 48  }
  0x6f   : > { %s1885_s9 = smov 104   ;;  %v1006_v11 = vld [vmem:[#allocation7 + $0x10] sm:$0xff]  ;;  %s1886_s29 = smov 40  }
  0x70   : > { %1598 = vmatpush3.bf16.msra.mxu0 %v1597_v7  ;;  %s1466_s26 = sshll.u32 %s1939_s22, 7  ;;  %p2255_p0 = scmp.ne.s32.totalorder %s2250_s23, 0 }
  0x71   : > { %1599 = vmatprep.subr.bf16.mxu0 %v1873_v0 }
  0x74   : > { %1601 = vmatpush3.bf16.msra.mxu0 %v1600_v10 }
  0x75   : > { %1602 = vmatprep.subr.bf16.mxu0 %v1873_v0 }
  0x78   : > { %1604 = vmatpush3.bf16.msra.mxu0 %v1603_v13 }
  0x79   : > { %1605 = vmatprep.subr.bf16.mxu0 %v1873_v0 }
  0x7c   : > { %1607 = vmatpush3.bf16.msra.mxu0 %v1606_v16 }
  0x7d   : > { %1608 = vmatprep.subr.bf16.mxu0 %v1873_v0  ;;  %v694_v0 = vld [vmem:[#allocation7 + $0x8] sm:$0xff] }
  0x80   : > { %1610 = vmatpush3.bf16.msra.mxu0 %v1609_v19 }
  0x81   : > { %1563 = vmatprep.subr.mxu0 %v1875_v1 }
  0x83   : > { %1531 = vmatmul.mubr.msk.f32.vlgmr.msra.gmra.mrb[0].mxu0 %vm289_vm1, %v269_v20 }
  0x84   : > { %1565 = vmatprep.mubr.msk.f32.mxu0 %vm1874_vm0, %v1875_v1 }
 0x156   : > { %v359_v22 = vpop.f32.mrb[0].mxu0 }
 0x157   : > { %v2115_v23 = vadd.f32 %v1446_v21, %v359_v22  ;;  %v1532_v24 = vpop.f32.mrb[1].mxu0 }
 0x159   : > { %452 = vrot.lane.b32.xlu1 %v2115_v23, %s1876_s8  ;;  %364 = vrot.lane.b32.xlu0 %v2115_v23, %s1877_s10  ;;  %s268_s8 = scalar_lea.vmem [#allocation8], %s1442_s13  ;;  %s1887_s13 = smov [#allocation8]  }
 0x15a   : > { %s1345_s10 = sshll.u32 %s268_s8, 4  ;;  %s2194_s10 = int_to_ptr.vmem [resolvable:$true] %s1345_s10 }
 0x15b   : > { %s1796_s22 = scalar_lea.vmem %s2194_s10, 128 }
 0x15c   : > { %p1797_p11 = scmp.ne.s32.totalorder %s2194_s10, %s1796_s22 }
 0x15d   : > { %531 = vrot.lane.b32.xlu1 %v2115_v23, %s1878_s11 }
 0x15e   : > { %p1798_p1 = pnand %p1797_p11, %p2255_p0 }
 0x160   : > { %p1799_p3 = pneg %p1798_p1 }
 0x1cb   : > { %v365_v25 = vpop.permute.xlu0 %364  ;;  %v453_v26 = vpop.permute.xlu1 %452 }
 0x1cc   : > { %1534 = vmatpush3.xpose.msk.msra.mxu1 %vm366_vm2, %v365_v25 }
 0x1cd   : > { %1538 = vmatprep.subr.mxu1 %v1875_v1 }
 0x1cf   : > { %1536 = vmatmul.mubr.msk.f32.vlgmr.msra.gmra.mrb[0].mxu1 %vm366_vm2, %v2115_v23  ;;  %v532_v35 = vpop.permute.xlu1 %531 }
 0x1d0   : > { %1539 = vmatpush3.msra.mxu1 %v453_v26  ;;  %1540 = vmatprep.mubr.msk.f32.mxu1 %vm1874_vm0, %v1875_v1 }
 0x1d1   : > { %1543 = vmatprep.subr.mxu1 %v1875_v1 }
 0x2a2   : > { %v437_v27 = vpop.f32.mrb[0].mxu1 }
 0x2a3   : > { %v1537_v28 = vpop.f32.mrb[1].mxu1  ;;  %v441_v29 = vsel %vm366_vm2, %v437_v27, -inf }
 0x2a4   : > { %442 = vmax.xlane.f32.xlu0 %v441_v29 }
 0x331   : > { %v443_v30 = vpop.xlane.xlu0 %442 }
 0x332   : > { %v444_v31 = vsub.f32 %v437_v27, %v443_v30 }
 0x334   : > { %v445_v32 = vmul.f32 1.442695, %v444_v31 }
 0x336   : > { %1694 = vpow2.f32 %v445_v32 }
 0x340   : > { %v1695_v33 = vpop.eup %1694 }
 0x341   : > { %v447_v34 = vsel %vm366_vm2, %v1695_v33, 0.0 }
 0x342   : > { %448 = vadd.xlane.f32.xlu1 %v447_v34 }
 0x353   : > { %529 = vrot.lane.b32.xlu1 %v2115_v23, %s1879_s28 }
 0x357   : > { %843 = vrot.lane.b32.xlu1 %v2115_v23, %s1880_s7  ;;  %s2192_s7 = scalar_lea.hbm %s2241_s5, %s1466_s26 }
 0x35b   : > { %841 = vrot.lane.b32.xlu1 %v2115_v23, %s1881_s6  ;;  %s1332_s6 = scalar_lea.sflag [#allocation4], %s2087_s12 }
 0x3cf   : > { %v449_v36 = vpop.xlane.xlu1 %448 }
 0x3d0   : > { %1696 = vrcp.f32 %v449_v36 }
 0x3d3   : > { %v530_v37 = vpop.permute.xlu1 %529 }
 0x3d7   : > { %v844_v38 = vpop.permute.xlu1 %843 }
 0x3d8   : > { %1564 = vmatpush3.xpose.msk.msra.mxu0 %vm366_vm2, %v844_v38 }
 0x3d9   : > { %1573 = vmatprep.subr.mxu0 %v1875_v1 }
 0x3da   : > { %v1697_v39 = vpop.eup %1696 }
 0x3db   : > { %v451_v40 = vmul.f32 %v1697_v39, %v1695_v33  ;;  %v842_v41 = vpop.permute.xlu1 %841 }
 0x3dc   : > { %1566 = vmatmul.mubr.msk.f32.vlgmr.msra.gmra.mrb[2].mxu0 %vm366_vm2, %v842_v41 }
 0x3dd   : > { %1541 = vmatmul.mubr.msk.f32.vlgmr.msra.gmra.mrb[2].mxu1 %vm366_vm2, %v451_v40  ;;  %1575 = vmatprep.mubr.msk.f32.mxu0 %vm1874_vm0, %v1875_v1 }
 0x3de   : > { %1544 = vmatpush3.xpose.msk.msra.mxu1 %vm366_vm2, %v532_v35  ;;  %1545 = vmatprep.mubr.msk.f32.mxu1 %vm1874_vm0, %v1875_v1 }
 0x3df   : > { %1548 = vmatprep.subr.mxu1 %v1875_v1  ;;  %1574 = vmatpush3.msra.mxu0 %v1006_v11 }
 0x3e0   : > { %1583 = vmatprep.subr.mxu0 %v1875_v1 }
 0x3e1   : > { %1546 = vmatmul.mubr.msk.f32.vlgmr.msra.gmra.mrb[4].mxu1 %vm366_vm2, %v530_v37  ;;  %v1464_v37 = vld [vmem:[%s2240_s4] ss:$0 sm:$0xff] }
 0x3e2   : > { %1550 = vmatprep.mubr.msk.f32.mxu1 %vm1874_vm0, %v1875_v1 }
 0x4af   : > { %v915_v42 = vpop.f32.mrb[2].mxu0 }
 0x4b0   : > { %v524_v43 = vpop.f32.mrb[2].mxu1  ;;  %v1567_v44 = vpop.f32.mrb[3].mxu0  ;;  %v919_v49 = vsel %vm366_vm2, %v915_v42, -inf }
 0x4b1   : > { %v1542_v45 = vpop.f32.mrb[3].mxu1 }
 0x4b4   : > { %v603_v46 = vpop.f32.mrb[4].mxu1 }
 0x4b5   : > { %v1547_v47 = vpop.f32.mrb[5].mxu1  ;;  %v607_v48 = vsel %vm366_vm2, %v603_v46, -inf }
 0x4b6   : > { %608 = vmax.xlane.f32.xlu0 %v607_v48 }
 0x4cc   : > { %618 = vrot.lane.b32.xlu0 %v2115_v23, %s1882_s30  ;;  %s1800_s30 = sshll.u32 %s1887_s13, 4  ;;  %s1801_s30 = int_to_ptr.vmem [resolvable:$false] %s1800_s30 }
 0x4cd   : > { %p1803_p7 = scmp.lt.s32.totalorder %s2194_s10, %s1801_s30 }
 0x4eb   : > { %920 = vmax.xlane.f32.xlu0 %v919_v49 }
 0x501   : > { %1083 = vrot.lane.b32.xlu0 %v2115_v23, %s1883_s15  ;;  %s1802_s15 = scalar_lea.vmem %s1801_s30, 256 }
 0x502   : > { %p1804_p9 = scmp.lt.s32.totalorder %s1802_s15, %s1796_s22 }
 0x504   : > { %p1805_p12 = por %p1804_p9, %p1803_p7 }
 0x506   : > { %p1806_p2 = pnand %p1805_p12, %p1799_p3 }
 0x543   : > { %v609_v50 = vpop.xlane.xlu0 %608 }
 0x544   : > { %v610_v51 = vsub.f32 %v603_v46, %v609_v50 }
 0x546   : > { %v611_v52 = vmul.f32 1.442695, %v610_v51 }
 0x547   : > { %v619_v53 = vpop.permute.xlu0 %618 }
 0x548   : > { %1698 = vpow2.f32 %v611_v52  ;;  %1549 = vmatpush3.msra.mxu1 %v619_v53 }
 0x549   : > { %1553 = vmatprep.subr.mxu1 %v1875_v1 }
 0x552   : > { %v1699_v54 = vpop.eup %1698 }
 0x553   : > { %v613_v55 = vsel %vm366_vm2, %v1699_v54, 0.0 }
 0x554   : > { %614 = vadd.xlane.f32.xlu1 %v613_v55 }
 0x578   : > { %v921_v56 = vpop.xlane.xlu0 %920 }
 0x579   : > { %v922_v57 = vsub.f32 %v915_v42, %v921_v56 }
 0x57b   : > { %v923_v58 = vmul.f32 1.442695, %v922_v57 }
 0x57c   : > { %v1084_v9 = vpop.permute.xlu0 %1083 }
 0x57d   : > { %1700 = vpow2.f32 %v923_v58 }
 0x587   : > { %v1701_v59 = vpop.eup %1700 }
 0x588   : > { %v925_v60 = vsel %vm366_vm2, %v1701_v59, 0.0 }
 0x589   : > { %926 = vadd.xlane.f32.xlu1 %v925_v60 }
 0x59a   : > { %930 = vrot.lane.b32.xlu1 %v2115_v23, %s1884_s16 }
 0x59e   : > { %1081 = vrot.lane.b32.xlu1 %v2115_v23, %s1885_s9 }
 0x5e1   : > { %v615_v61 = vpop.xlane.xlu1 %614 }
 0x5e2   : > { %1702 = vrcp.f32 %v615_v61 }
 0x5ec   : > { %v1703_v62 = vpop.eup %1702 }
 0x5ed   : > { %v617_v63 = vmul.f32 %v1703_v62, %v1699_v54 }
 0x5ef   : > { %1551 = vmatmul.mubr.msk.f32.vlgmr.msra.gmra.mrb[6].mxu1 %vm366_vm2, %v617_v63 }
 0x5f0   : > { %1554 = vmatpush3.msra.mxu1 %v694_v0  ;;  %1555 = vmatprep.mubr.msk.f32.mxu1 %vm1874_vm0, %v1875_v1 }
 0x5f1   : > { %1558 = vmatprep.subr.mxu1 %v1875_v1 }
 0x616   : > { %v927_v2 = vpop.xlane.xlu1 %926 }
 0x617   : > { %1704 = vrcp.f32 %v927_v2 }
 0x61a   : > { %v931_v7 = vpop.permute.xlu1 %930 }
 0x61e   : > { %v1082_v10 = vpop.permute.xlu1 %1081 }
 0x621   : > { %v1705_v6 = vpop.eup %1704 }
 0x622   : > { %v929_v8 = vmul.f32 %v1705_v6, %v1701_v59 }
 0x6c2   : > { %v690_v4 = vpop.f32.mrb[6].mxu1 }
 0x6c3   : > { %v1552_v5 = vpop.f32.mrb[7].mxu1  ;;  %1556 = vmatmul.mubr.msk.f32.vlgmr.msra.gmra.mrb[8].mxu1 %vm366_vm2, %v690_v4 }
 0x6c4   : > { %1559 = vmatpush3.msra.mxu1 %v528_v3  ;;  %1560 = vmatprep.mubr.msk.f32.mxu1 %vm1874_vm0, %v1875_v1 }
 0x6c5   : > { %1568 = vmatprep.subr.mxu1 %v1875_v1 }
 0x6c7   : > { %1561 = vmatmul.mubr.msk.f32.vlgmr.msra.gmra.mrb[10].mxu1 %vm366_vm2, %v524_v43 }
 0x6c8   : > { %1569 = vmatpush3.msra.mxu1 %v931_v7  ;;  %1570 = vmatprep.mubr.msk.f32.mxu1 %vm1874_vm0, %v1875_v1 }
 0x6c9   : > { %1578 = vmatprep.subr.mxu1 %v1875_v1 }
 0x6cb   : > { %1571 = vmatmul.mubr.msk.f32.vlgmr.msra.gmra.mrb[12].mxu1 %vm366_vm2, %v929_v8 }
 0x6cc   : > { %1580 = vmatprep.mubr.msk.f32.mxu1 %vm1874_vm0, %v1875_v1 }
 0x6cf   : > { %1579 = vmatpush3.xpose.msk.msra.mxu1 %vm366_vm2, %v1084_v9 }
 0x6d0   : > { %1588 = vmatprep.subr.mxu1 %v1875_v1 }
 0x6d2   : > { %1581 = vmatmul.mubr.msk.f32.vlgmr.msra.gmra.mrb[14].mxu1 %vm366_vm2, %v1082_v10 }
 0x6d3   : > { %1590 = vmatprep.mubr.msk.f32.mxu1 %vm1874_vm0, %v1875_v1 }
 0x796   : > { %v764_v12 = vpop.f32.mrb[8].mxu1 }
 0x797   : > { %v1557_v13 = vpop.f32.mrb[9].mxu1 }
 0x79a   : > { %v837_v14 = vpop.f32.mrb[10].mxu1 }
 0x79b   : > { %v838_v15 = vadd.f32 %v837_v14, %v764_v12  ;;  %v1562_v16 = vpop.f32.mrb[11].mxu1 }
 0x79e   : > { %v1002_v17 = vpop.f32.mrb[12].mxu1 }
 0x79f   : > { %v1572_v18 = vpop.f32.mrb[13].mxu1  ;;  %1576 = vmatmul.mubr.msk.f32.vlgmr.msra.gmra.mrb[4].mxu0 %vm366_vm2, %v1002_v17 }
 0x7a0   : > { %1585 = vmatprep.mubr.msk.f32.mxu0 %vm1874_vm0, %v1875_v1  ;;  %v1246_v1 = vld [vmem:[#allocation7 + $0x18] sm:$0xff] }
 0x7a1   : > { %1589 = vmatpush3.msra.mxu1 %v1246_v1 }
 0x7a5   : > { %v1155_v19 = vpop.f32.mrb[14].mxu1 }
 0x7a6   : > { %v1582_v20 = vpop.f32.mrb[15].mxu1  ;;  %v1159_v21 = vsel %vm366_vm2, %v1155_v19, -inf }
 0x7a7   : > { %1160 = vmax.xlane.f32.xlu1 %v1159_v21 }
 0x7b8   : > { %1170 = vrot.lane.b32.xlu1 %v2115_v23, %s1886_s29 }
 0x834   : > { %v1161_v22 = vpop.xlane.xlu1 %1160 }
 0x835   : > { %v1162_v24 = vsub.f32 %v1155_v19, %v1161_v22 }
 0x837   : > { %v1163_v25 = vmul.f32 1.442695, %v1162_v24 }
 0x838   : > { %v1171_v26 = vpop.permute.xlu1 %1170 }
 0x839   : > { %1706 = vpow2.f32 %v1163_v25  ;;  %1584 = vmatpush3.msra.mxu0 %v1171_v26 }
 0x843   : > { %v1707_v27 = vpop.eup %1706 }
 0x844   : > { %v1165_v28 = vsel %vm366_vm2, %v1707_v27, 0.0 }
 0x845   : > { %1166 = vadd.xlane.f32.xlu0 %v1165_v28 }
 0x872   : > { %v1076_v29 = vpop.f32.mrb[4].mxu0 }
 0x873   : > { %v1080_v30 = vadd.f32 %v1076_v29, %v838_v15  ;;  %v1577_v31 = vpop.f32.mrb[5].mxu0 }
 0x8d2   : > { %v1167_v32 = vpop.xlane.xlu0 %1166 }
 0x8d3   : > { %1708 = vrcp.f32 %v1167_v32 }
 0x8dd   : > { %v1709_v23 = vpop.eup %1708 }
 0x8de   : > { %v1169_v33 = vmul.f32 %v1709_v23, %v1707_v27 }
 0x8e0   : > { %1586 = vmatmul.mubr.msk.f32.vlgmr.msra.gmra.mrb[6].mxu0 %vm366_vm2, %v1169_v33 }
 0x9b3   : > { %v1242_v34 = vpop.f32.mrb[6].mxu0 }
 0x9b4   : > { %v1587_v35 = vpop.f32.mrb[7].mxu0  ;;  %1591 = vmatmul.mubr.msk.f32.vlgmr.msra.gmra.mrb[16].mxu1 %vm366_vm2, %v1242_v34 }
 0xa87   : > { %v1316_v36 = vpop.f32.mrb[16].mxu1 }
 0xa88   : > { %v1320_v38 = vadd.f32 %v1316_v36, %v1080_v30  ;;  %v1592_v39 = vpop.f32.mrb[17].mxu1 }
 0xa8a   : > { %v1328_v40 = vadd.f32 %v1464_v37, %v1320_v38 }
 0xa8c   : > { %1330 = vst.msk [vmem:[%s268_s8] sm:$0xff] %vm1329_vm3, %v1328_v40 }
 0xa8d   : > { %1809 = shalt.err (!%p1806_p2)
}
 0xa8e   : > { %s1810_s12 = scalar_lea.hbm %s2192_s7, 128  ;;  %s1814_s29 = scalar_lea.hbm %s2241_s5, 256 }
 0xa8f   : > { %p1811_p13 = scmp.ne.s32.totalorder %s2192_s7, %s1810_s12  ;;  %p1815_p4 = scmp.lt.u32.totalorder %s2192_s7, %s2241_s5 }
 0xa90   : > { %p1816_p5 = scmp.lt.u32.totalorder %s1814_s29, %s1810_s12  ;;  %p1818_p11 = scmp.lt.u32.totalorder %s1810_s12, %s2192_s7 }
 0xa91   : > { %p1812_p6 = pnand %p1811_p13, %p2255_p0 }
 0xa92   : > { %p1817_p8 = por %p1816_p5, %p1815_p4 }
 0xa93   : > { %p1813_p10 = pneg %p1812_p6 }
 0xa94   : > { %p1819_p1 = por %p1818_p11, %p1817_p8 }
 0xa96   : > { %p1820_p3 = pnand %p1819_p1, %p1813_p10 }
 0xa98   : > { %1823 = shalt.err (!%p1820_p3)
}
 0xa99   : > { %1621 = dma.vmem_to_hbm [thread:$0]  (%p2255_p0), %s2194_s10, 128, %s2192_s7, %s1332_s6  }
 0xa9a PF: > { %s1357_s26 = sand.u32 1, %s1854_s18   ;;  %p2256_p7 = scmp.ne.s32.totalorder %s2246_s25, 0 }
 0xa9b   : > { %p2257_p9 = scmp.ge.s32.totalorder %s1866_s21, 2  ;;  %s1358_s8 = scalar_lea.sflag [#allocation4], %s1357_s26 }
 0xa9d   : > { %p1635_p12 = pnand %p2257_p9, %p2256_p7 }
 0xa9f   : > { %1849 = dma.done.wait (!%p1635_p12), %s1358_s8, 128  }
 0xaa0   : > { %1851 = vsyncadd (!%p1635_p12), %s1358_s8, 4294967168  ;;  %p19_p2 = scmp.ge.s32.totalorder %s2028_s14, 4   ;;  %s2258_s18 = smov %s1858_s19 }
 0xaa1   : > { %s2259_s19 = smov %s1862_s20  ;;  %s2260_s20 = smov %s2044_s27 }
 0xaa2   : > { %s2261_s21 = smov %s2028_s14  ;;  %21 = sbr.rel (!%p19_p2) target bundleno = 6 (0x6), region = 93 }
 0xaa9   :  { %1363 = vsyncpa [#allocation3], 1 }
 0xaaa   :  { %1365 = vsyncpa [#allocation3 + $0x1], 1 }
 0xaab   :  { %1366 = vsyncpa [#allocation6], 1 }
 0xaac   :  { %1367 = vsyncpa [#allocation4], 1 }
 0xaad   :  { %1369 = vsyncpa [#allocation4 + $0x1], 1 }

</bundles_post_ra>
